<compile_context>
chip_gen: v5e
topology: v5e:2x2
jax: 0.10.0
libtpu: 0.0.40
codegen_flags: <defaults>
</compile_context>

<pallas_src>
import jax
import jax.numpy as jnp
from jax.experimental import pallas as pl
from jax.experimental.pallas import tpu as pltpu

_MIB = 1024 * 1024


def _perm_equi2_max_kernel(x_ref, wg_ref, wl_ref, bg_ref, o_ref):
    # x_ref: (TB, N, Din); wg/wl: (Din, TN); bg: (1, TN); o_ref: (TB, N, TN).
    TB, N, Din = x_ref.shape
    TN = o_ref.shape[-1]

    x3 = x_ref[...]                                        # (TB, N, Din)

    # Permutation-invariant context: max over the set dimension (XLU).
    xm = jnp.max(x3, axis=1)                               # (TB, Din)

    # Gamma over all rows: one tall MXU matmul with f32 accumulation.
    g = jnp.dot(x3.reshape(TB * N, Din), wg_ref[...],
                preferred_element_type=jnp.float32)        # (TB*N, TN)

    # Lambda on the un-broadcast max: N x less MXU work than broadcasting
    # the max back over the set before the contraction.
    lam = jnp.dot(xm, wl_ref[...],
                  preferred_element_type=jnp.float32)      # (TB, TN)

    # out = Gamma(x) + bg - Lambda(max_n x); lam broadcasts over the set dim.
    out = (g.reshape(TB, N, TN)
           + bg_ref[...].astype(jnp.float32)               # (1, TN)
           - lam[:, None, :])                              # (TB, 1, TN)
    o_ref[...] = out.astype(o_ref.dtype)


def _vmem_capacity_bytes(default_bytes=64 * _MIB):
    """Physical VMEM capacity (conservative default if the query fails)."""
    try:
        info = pltpu.get_tpu_info()
        cap = int(getattr(info, "vmem_capacity_bytes", 0))
        return cap if cap > 0 else default_bytes
    except Exception:
        return default_bytes


def _pick_dout_tile(din, dout, w_itemsize, weight_budget):
    """Keep the whole (Din, Dout) weights resident (single copy) when they
    fit; otherwise stream lane-dense (Din, TN) column tiles (TN % 128 == 0)."""
    resident = (2 * din * dout + dout) * w_itemsize        # wg + wl + bg, 1 buffer
    if dout % 128 != 0 or resident <= weight_budget:
        return dout
    tn = 128
    for cand in range(128, dout, 128):
        if dout % cand == 0 and 2 * (2 * din * cand + cand) * w_itemsize <= weight_budget:
            tn = cand
    return tn


def _pick_batch_tile(B, n_pad, din, tn, itemsize, data_budget,
                     target_rows=512, min_steps=4):
    """Largest divisor TB of B such that the double-buffered x/out tiles fit
    `data_budget`, at least `min_steps` batch grid steps remain (when B
    allows, so the pipeline has later steps to prefetch), preferring
    TB*n_pad >= target_rows so each MXU pass is tall."""
    bytes_per_row = max(1, (din + tn) * itemsize)
    max_rows = max(n_pad, data_budget // (2 * bytes_per_row))   # x2: double buffers
    cap_tb = max(1, min(B, max_rows // n_pad))
    if B >= min_steps:
        cap_tb = min(cap_tb, max(1, B // min_steps))
    tb = 1
    for d in range(1, cap_tb + 1):
        if B % d == 0:
            tb = d
            if d * n_pad >= target_rows:
                break
    return tb


def perm_equi2_max(x, wg, wl, bg, *, compute_dtype=None):
    """x: (B, N, Din); wg, wl: (Din, Dout) (pre-transposed nn.Linear weights);
    bg: (Dout,) or (1, Dout).  Returns Gamma(x) - Lambda(max_n x): (B, N, Dout).

    compute_dtype: optionally cast x / weights (e.g. jnp.bfloat16 on v6e/v7x)
    for the matmul inputs; MXU accumulation and the epilogue stay in f32.
    """
    B, N, Din = x.shape
    Dout = wg.shape[1]
    bg = jnp.asarray(bg).reshape(1, Dout)

    if compute_dtype is not None:
        x = x.astype(compute_dtype)
        wg = wg.astype(compute_dtype)
        wl = wl.astype(compute_dtype)
    out_dtype = x.dtype

    # Pad the set dim to a sublane multiple with duplicated rows (max-neutral)
    # so the in-kernel (TB, N, Din) -> (TB*N, Din) collapse stays layout-trivial.
    n_pad = ((N + 7) // 8) * 8
    if n_pad != N:
        x = jnp.pad(x, ((0, 0), (0, n_pad - N), (0, 0)), mode="edge")

    x_itemsize = jnp.dtype(x.dtype).itemsize
    w_itemsize = jnp.dtype(wg.dtype).itemsize
    o_itemsize = jnp.dtype(out_dtype).itemsize

    # Generation-aware VMEM budget with an explicit limit for Mosaic.
    vmem_cap = _vmem_capacity_bytes()
    vmem_limit = (vmem_cap * 3) // 4                 # headroom for compiler scratch
    weight_budget = vmem_limit // 2

    TN = _pick_dout_tile(Din, Dout, w_itemsize, weight_budget)
    n_j = Dout // TN
    if n_j == 1:
        weight_resident = (2 * Din * Dout + Dout) * w_itemsize       # single copy
    else:
        weight_resident = 2 * (2 * Din * TN + TN) * w_itemsize       # streamed, 2 bufs

    data_budget = max(4 * _MIB, vmem_limit - weight_resident - 2 * _MIB)
    TB = _pick_batch_tile(B, n_pad, Din, TN, max(x_itemsize, o_itemsize), data_budget)
    n_b = B // TB
    grid = (n_b, n_j)
    # TODO(synk): a single batch element with very large N*Din/Dout can still
    # exceed the VMEM budget; that would need an N-tiling grid axis with a
    # two-pass (max reduction, then matmul) schedule.

    if n_j == 1:
        # Grid-invariant operands: single resident VMEM copy, no pipeline
        # double-buffering (the Buffered(1) intent from the perf review).
        wg_spec = pl.BlockSpec(memory_space=pltpu.MemorySpace.VMEM)
        wl_spec = pl.BlockSpec(memory_space=pltpu.MemorySpace.VMEM)
        bg_spec = pl.BlockSpec(memory_space=pltpu.MemorySpace.VMEM)
    else:
        # Stream lane-dense (Din, TN) weight column tiles (TN % 128 == 0),
        # which also keeps the output minor dim >= 128 (unmasked stores).
        wg_spec = pl.BlockSpec((Din, TN), lambda b, j: (0, j))
        wl_spec = pl.BlockSpec((Din, TN), lambda b, j: (0, j))
        bg_spec = pl.BlockSpec((1, TN), lambda b, j: (0, j))

    # Advisory cost hint (Lambda shrunk to one row per batch element).
    flops = (2 * B * n_pad * Din * Dout        # Gamma
             + 2 * B * Din * Dout              # Lambda on the un-broadcast max
             + 3 * B * n_pad * Dout)           # epilogue add/sub
    w_reads = 1 if n_j == 1 else n_b
    bytes_accessed = (B * n_pad * Din * x_itemsize
                      + w_reads * 2 * Din * Dout * w_itemsize
                      + Dout * jnp.dtype(bg.dtype).itemsize
                      + B * n_pad * Dout * o_itemsize)

    out = pl.pallas_call(
        _perm_equi2_max_kernel,
        out_shape=jax.ShapeDtypeStruct((B, n_pad, Dout), out_dtype),
        grid_spec=pltpu.PrefetchScalarGridSpec(
            num_scalar_prefetch=0,
            grid=grid,
            in_specs=[
                pl.BlockSpec((TB, n_pad, Din), lambda b, j: (b, 0, 0)),
                wg_spec,
                wl_spec,
                bg_spec,
            ],
            out_specs=pl.BlockSpec((TB, n_pad, TN), lambda b, j: (b, 0, j)),
        ),
        compiler_params=pltpu.CompilerParams(
            dimension_semantics=("parallel", "parallel"),   # megacore sharding
            vmem_limit_bytes=int(vmem_limit),
        ),
        cost_estimate=pl.CostEstimate(
            flops=int(flops), transcendentals=0, bytes_accessed=int(bytes_accessed)),
    )(x, wg, wl, bg)

    return out[:, :N, :] if n_pad != N else out


if __name__ == "__main__":
    # Small but tiling-relevant shapes: B=64 set instances of size N=8 with
    # 32 -> 32 features.  The wrapper packs TB=16 instances (128 rows) per
    # grid step, leaving a 4-step parallel batch grid so the pipeline can
    # overlap x/out DMAs with compute.
    B, N, Din, Dout = 64, 8, 32, 32

    key = jax.random.PRNGKey(0)
    kx, kwg, kbg, kwl = jax.random.split(key, 4)

    x = jax.random.normal(kx, (B, N, Din), dtype=jnp.float32)

    # Deterministic parameter init (mimics nn.Linear uniform(-1/sqrt(in), 1/sqrt(in))).
    bound = 1.0 / (Din ** 0.5)
    wg = jax.random.uniform(kwg, (Din, Dout), minval=-bound, maxval=bound,
                            dtype=jnp.float32)   # Gamma weight (pre-transposed)
    bg = jax.random.uniform(kbg, (1, Dout), minval=-bound, maxval=bound,
                            dtype=jnp.float32)   # Gamma bias
    wl = jax.random.uniform(kwl, (Din, Dout), minval=-bound, maxval=bound,
                            dtype=jnp.float32)   # Lambda weight (no bias)

    # f32 path + reference check.
    out = jax.block_until_ready(perm_equi2_max(x, wg, wl, bg))
    xm = jnp.max(x, axis=1, keepdims=True)
    ref = (x @ wg + bg) - (xm @ wl)
    assert out.shape == (B, N, Dout)
    assert jnp.allclose(out, ref, atol=1e-4, rtol=1e-4), "f32 mismatch vs reference"

    # Ragged-N path (N=5 -> edge-padded to 8 wrapper-side, output sliced).
    x_odd = x[:, :5, :]
    out_odd = jax.block_until_ready(perm_equi2_max(x_odd, wg, wl, bg))
    ref_odd = (x_odd @ wg + bg) - (jnp.max(x_odd, axis=1, keepdims=True) @ wl)
    assert out_odd.shape == (B, 5, Dout)
    assert jnp.allclose(out_odd, ref_odd, atol=1e-4, rtol=1e-4), "ragged-N mismatch"

    # bf16 input path (v6e/v7x HBM-traffic optimization); f32 accumulation kept.
    out_bf16 = jax.block_until_ready(
        perm_equi2_max(x, wg, wl, bg, compute_dtype=jnp.bfloat16))
    assert out_bf16.shape == (B, N, Dout)
    assert jnp.allclose(out_bf16.astype(jnp.float32), ref, atol=0.5, rtol=0.05), \
        "bf16 mismatch vs reference"

    print("KERNEL_OK")
</pallas_src>

<mosaic_0001>
module attributes {stable_mosaic.version = 11 : i64} {
  func.func @_perm_equi2_max_kernel(%arg0: i32, %arg1: i32, %arg2: memref<16x8x32xf32, #tpu.memory_space<vmem>>, %arg3: memref<32x32xf32, #tpu.memory_space<vmem>>, %arg4: memref<32x32xf32, #tpu.memory_space<vmem>>, %arg5: memref<1x32xf32, #tpu.memory_space<vmem>>, %arg6: memref<16x8x32xf32, #tpu.memory_space<vmem>>) attributes {dimension_semantics = [#tpu.dimension_semantics<parallel>, #tpu.dimension_semantics<parallel>], iteration_bounds = array<i64: 4, 1>, scalar_prefetch = 0 : i64, scratch_operands = 0 : i64, tpu.core_type = #tpu.core_type<tc>, window_params = [{transform_indices = @transform_0, window_bounds = array<i64: 16, 8, 32>}, {pipeline_mode = #tpu.pipeline_mode<synchronous>, transform_indices = @transform_1, window_bounds = array<i64: 32, 32>}, {pipeline_mode = #tpu.pipeline_mode<synchronous>, transform_indices = @transform_2, window_bounds = array<i64: 32, 32>}, {pipeline_mode = #tpu.pipeline_mode<synchronous>, transform_indices = @transform_3, window_bounds = array<i64: 1, 32>}, {transform_indices = @transform_4, window_bounds = array<i64: 16, 8, 32>}]} {
    %c0 = arith.constant 0 : index
    %c0_0 = arith.constant 0 : index
    %c0_1 = arith.constant 0 : index
    %0 = vector.load %arg2[%c0, %c0_0, %c0_1] : memref<16x8x32xf32, #tpu.memory_space<vmem>>, vector<16x8x32xf32>
    %cst = arith.constant dense<0xFF800000> : vector<16x32xf32>
    %1 = vector.multi_reduction <maximumf>, %0, %cst [1] : vector<16x8x32xf32> to vector<16x32xf32>
    %2 = vector.shape_cast %0 : vector<16x8x32xf32> to vector<128x32xf32>
    %c0_2 = arith.constant 0 : index
    %c0_3 = arith.constant 0 : index
    %3 = vector.load %arg3[%c0_2, %c0_3] : memref<32x32xf32, #tpu.memory_space<vmem>>, vector<32x32xf32>
    %cst_4 = arith.constant dense<0.000000e+00> : vector<128x32xf32>
    %4 = tpu.matmul %2, %3, %cst_4 {dimension_numbers = #tpu.dot_dimension_numbers<[1], [0], [0], [1], [0, 0, 1, 1], [], []>} : vector<128x32xf32>, vector<32x32xf32>, vector<128x32xf32> -> vector<128x32xf32>
    %c0_5 = arith.constant 0 : index
    %c0_6 = arith.constant 0 : index
    %5 = vector.load %arg4[%c0_5, %c0_6] : memref<32x32xf32, #tpu.memory_space<vmem>>, vector<32x32xf32>
    %cst_7 = arith.constant dense<0.000000e+00> : vector<16x32xf32>
    %6 = tpu.matmul %1, %5, %cst_7 {dimension_numbers = #tpu.dot_dimension_numbers<[1], [0], [0], [1], [0, 0, 1, 1], [], []>} : vector<16x32xf32>, vector<32x32xf32>, vector<16x32xf32> -> vector<16x32xf32>
    %7 = vector.shape_cast %4 : vector<128x32xf32> to vector<16x8x32xf32>
    %c0_8 = arith.constant 0 : index
    %c0_9 = arith.constant 0 : index
    %8 = vector.load %arg5[%c0_8, %c0_9] : memref<1x32xf32, #tpu.memory_space<vmem>>, vector<1x32xf32>
    %9 = vector.shape_cast %8 : vector<1x32xf32> to vector<1x1x32xf32>
    %10 = vector.broadcast %9 : vector<1x1x32xf32> to vector<16x8x32xf32>
    %11 = arith.addf %7, %10 : vector<16x8x32xf32>
    %12 = vector.shape_cast %6 : vector<16x32xf32> to vector<16x1x32xf32>
    %13 = vector.broadcast %12 : vector<16x1x32xf32> to vector<16x8x32xf32>
    %14 = arith.subf %11, %13 : vector<16x8x32xf32>
    %c0_10 = arith.constant 0 : index
    %c0_11 = arith.constant 0 : index
    %c0_12 = arith.constant 0 : index
    %15 = vector.load %arg6[%c0_10, %c0_11, %c0_12] : memref<16x8x32xf32, #tpu.memory_space<vmem>>, vector<16x8x32xf32>
    tpu.vector_store %arg6[%c0_10, %c0_11, %c0_12], %14 {strides = array<i32>} : memref<16x8x32xf32, #tpu.memory_space<vmem>>, vector<16x8x32xf32>,
    return
  }
  func.func @transform_0(%arg0: i32, %arg1: i32) -> (i32, i32, i32) {
    %c0_i32 = arith.constant 0 : i32
    %c0_i32_0 = arith.constant 0 : i32
    %c0_i32_1 = arith.constant 0 : i32
    return %arg0, %c0_i32, %c0_i32_0 : i32, i32, i32
  }
  func.func @transform_1(%arg0: i32, %arg1: i32) -> (i32, i32) {
    %c0_i32 = arith.constant 0 : i32
    %c0_i32_0 = arith.constant 0 : i32
    %c0_i32_1 = arith.constant 0 : i32
    return %c0_i32, %c0_i32_0 : i32, i32
  }
  func.func @transform_2(%arg0: i32, %arg1: i32) -> (i32, i32) {
    %c0_i32 = arith.constant 0 : i32
    %c0_i32_0 = arith.constant 0 : i32
    %c0_i32_1 = arith.constant 0 : i32
    return %c0_i32, %c0_i32_0 : i32, i32
  }
  func.func @transform_3(%arg0: i32, %arg1: i32) -> (i32, i32) {
    %c0_i32 = arith.constant 0 : i32
    %c0_i32_0 = arith.constant 0 : i32
    %c0_i32_1 = arith.constant 0 : i32
    return %c0_i32, %c0_i32_0 : i32, i32
  }
  func.func @transform_4(%arg0: i32, %arg1: i32) -> (i32, i32, i32) {
    %c0_i32 = arith.constant 0 : i32
    %c0_i32_0 = arith.constant 0 : i32
    return %arg0, %c0_i32, %arg1 : i32, i32, i32
  }
}

</mosaic_0001>

<bundles_post_ra>
// kernel: tpu_custom_call.1
= control target key start
LH: loop header
LB: loop body
LE: loop exit
PB: predicated region body
PF: predicated region fallthrough
CT: control target
= control target key end

     0   :  { %s825_s15 = smov 0   ;;  %s827_s16 = smov 0   ;;  %s1053_s0 = inlined_call_operand.vmem [shape: f32[64,8,32], index: 0, kind: input, shape index: {}]   ;;  %s1054_s1 = inlined_call_operand.vmem [shape: f32[32,32], index: 1, kind: input, shape index: {}]   ;;  %s1055_s2 = inlined_call_operand.vmem [shape: f32[32,32], index: 2, kind: input, shape index: {}]   ;;  %s1056_s3 = inlined_call_operand.vmem [shape: f32[1,32], index: 3, kind: input, shape index: {}]   ;;  %s1057_s4 = inlined_call_operand.vmem [shape: f32[64,8,32], index: 4, kind: output, shape index: {}]  }
   0x1   :  { %s829_s17 = smov 0  }
   0x2 LB: > { %s26_s18 = sadd.s32 1, %s794_s16  ;;  %p714_p0 = scmp.ge.s32.totalorder %s798_s17, 1  ;;  %s798_s17 = sphi %s829_s17, %s14_s17   ;;  %s794_s16 = sphi %s827_s16, %s1059_s16   ;;  %s790_s15 = sphi %s825_s15, %s1058_s15  }
   0x3   : > { %p28_p1 = scmp.ge.s32.totalorder %s26_s18, 4  ;;  %p177_p2 = scmp.lt.s32.totalorder %s798_s17, 5 }
   0x5   : > { %s1061_s18 = smov (%p28_p1, %s26_s18), 0  ;;  %p178_p3 = pnand %p714_p0, %p177_p2 }
   0x6   : > { %s715_s23 = sshll.u32 (!%p178_p3), %s790_s15, 4 }
   0x7   : > { %181 = sbr.rel (%p178_p3) target bundleno = 197 (0xc5), region = 36  ;;  %p207_p4 = scmp.lt.s32.totalorder (!%p178_p3), %s715_s23, 63 }
   0xc   : > { %v353_v0 = vld [vmem:[%s1054_s1 + $0x18] sm:$0xff]  ;;  %v352_v1 = vld [vmem:[%s1054_s1 + $0x10] sm:$0xff]  ;;  %v351_v2 = vld [vmem:[%s1054_s1 + $0x8] sm:$0xff]  ;;  %s1063_s23 = smov (!%p207_p4, %s715_s23), 63  ;;  %vm237_vm0 = vcmask 261120   ;;  %vm487_vm1 = vcmask 1041409  }
   0xd   : > { %414 = vmatpush.msra.mxu0 %v353_v0  ;;  %740 = vmatpush.msra.mxu2 %v353_v0  ;;  %v350_v3 = vld [vmem:[%s1054_s1] sm:$0xff]  ;;  %s716_s28 = sshll.u32 %s1063_s23, 3  ;;  %v470_v7 = vld [vmem:[%s1055_s2 + $0x18] sm:$0xff]  ;;  %v469_v28 = vld [vmem:[%s1055_s2 + $0x10] sm:$0xff]  ;;  %vm489_vm2 = vcmask 1042434   ;;  %vm491_vm3 = vcmask 1043459  }
   0xe   : > { %741 = vmatpush.msra.mxu3 %v353_v0  ;;  %739 = vmatpush.msra.mxu1 %v353_v0  ;;  %s863_s5 = scalar_lea.vmem %s1053_s0, %s716_s28  ;;  %v468_v37 = vld [vmem:[%s1055_s2 + $0x8] sm:$0xff]  ;;  %v467_v46 = vld [vmem:[%s1055_s2] sm:$0xff]  ;;  %vm493_vm4 = vcmask 1044484   ;;  %vm495_vm5 = vcmask 1045509   ;;  %vm497_vm6 = vcmask 1046534   ;;  %vm499_vm7 = vcmask 1047559   ;;  %s1001_s21 = scalar_lea.vmem %s1057_s4, %s716_s28 }
   0xf   : > { %415 = vmatpush.msra.mxu0 %v352_v1  ;;  %743 = vmatpush.msra.mxu2 %v352_v1  ;;  %v221_v4 = vld [vmem:[%s863_s5] sm:$0xff]  ;;  %v227_v5 = vld [vmem:[%s863_s5 + $0x30] sm:$0xff]  ;;  %v232_v6 = vld [vmem:[%s863_s5 + $0x58] sm:$0xff] }
  0x10   : > { %744 = vmatpush.msra.mxu3 %v352_v1  ;;  %742 = vmatpush.msra.mxu1 %v352_v1  ;;  %v238_v8 = vsel %vm237_vm0, %v221_v4, -inf  ;;  %v280_v9 = vsel %vm237_vm0, %v227_v5, -inf  ;;  %v315_v10 = vsel %vm237_vm0, %v232_v6, -inf  ;;  %v222_v11 = vld [vmem:[%s863_s5 + $0x8] sm:$0xff]  ;;  %v228_v12 = vld [vmem:[%s863_s5 + $0x38] sm:$0xff]  ;;  %v233_v13 = vld [vmem:[%s863_s5 + $0x60] sm:$0xff] }
  0x11   : > { %416 = vmatpush.msra.mxu0 %v351_v2  ;;  %746 = vmatpush.msra.mxu2 %v351_v2  ;;  %v239_v14 = vrot.slane %v238_v8, 4  ;;  %v281_v15 = vrot.slane %v280_v9, 4  ;;  %v316_v16 = vrot.slane %v315_v10, 4  ;;  %v245_v17 = vsel %vm237_vm0, %v222_v11, -inf  ;;  %v226_v18 = vld [vmem:[%s863_s5 + $0x28] sm:$0xff]  ;;  %v883_v19 = vld [vmem:[%s863_s5 + $0x10] sm:$0xff] }
  0x12   : > { %747 = vmatpush.msra.mxu3 %v351_v2  ;;  %745 = vmatpush.msra.mxu1 %v351_v2  ;;  %v246_v20 = vrot.slane %v245_v17, 4  ;;  %v287_v21 = vsel %vm237_vm0, %v228_v12, -inf  ;;  %v322_v22 = vsel %vm237_vm0, %v233_v13, -inf  ;;  %v273_v23 = vsel %vm237_vm0, %v226_v18, -inf  ;;  %v229_v57 = vld [vmem:[%s863_s5 + $0x40] sm:$0xff]  ;;  %v234_v58 = vld [vmem:[%s863_s5 + $0x68] sm:$0xff] }
  0x13   : > { %417 = vmatpush.msra.mxu0 %v350_v3  ;;  %749 = vmatpush.msra.mxu2 %v350_v3  ;;  %v240_v24 = vmax.f32 %v238_v8, %v239_v14  ;;  %v282_v25 = vmax.f32 %v280_v9, %v281_v15  ;;  %v317_v26 = vmax.f32 %v315_v10, %v316_v16  ;;  %v288_v27 = vrot.slane %v287_v21, 4  ;;  %v912_v59 = vld [vmem:[%s863_s5 + $0x18] sm:$0xff]  ;;  %v918_v0 = vld [vmem:[%s863_s5 + $0x20] sm:$0xff]  ;;  %v933_v15 = vld [vmem:[%s863_s5 + $0x50] sm:$0xff] }
  0x14   : > { %750 = vmatpush.msra.mxu3 %v350_v3  ;;  %719 = vmatmul.msk.f32.vlgmr.msra.gmra.mxu0 %vm237_vm0, %v221_v4  ;;  %v247_v29 = vmax.f32 %v245_v17, %v246_v20  ;;  %v323_v30 = vrot.slane %v322_v22, 4  ;;  %v274_v31 = vrot.slane %v273_v23, 4  ;;  %v252_v32 = vsel %vm237_vm0, %v883_v19, -inf }
  0x15   : > { %725 = vmatmul.msk.f32.vlgmr.msra.gmra.mxu2 %vm237_vm0, %v227_v5  ;;  %730 = vmatmul.msk.f32.vlgmr.msra.gmra.mxu3 %vm237_vm0, %v232_v6  ;;  %v241_v33 = vrot.slane %v240_v24, 2  ;;  %v283_v34 = vrot.slane %v282_v25, 2  ;;  %v318_v35 = vrot.slane %v317_v26, 2  ;;  %v289_v36 = vmax.f32 %v287_v21, %v288_v27  ;;  %v230_v5 = vld [vmem:[%s863_s5 + $0x48] sm:$0xff]  ;;  %v235_v6 = vld [vmem:[%s863_s5 + $0x70] sm:$0xff] }
  0x16   : > { %748 = vmatpush.msra.mxu1 %v350_v3  ;;  %v248_v38 = vrot.slane %v247_v29, 2  ;;  %v324_v39 = vmax.f32 %v322_v22, %v323_v30  ;;  %v275_v40 = vmax.f32 %v273_v23, %v274_v31  ;;  %v253_v41 = vrot.slane %v252_v32, 4 }
  0x17   : > { %724 = vmatmul.msk.f32.vlgmr.msra.gmra.mxu1 %vm237_vm0, %v226_v18  ;;  %v242_v42 = vmax.f32 %v240_v24, %v241_v33  ;;  %v284_v43 = vmax.f32 %v282_v25, %v283_v34  ;;  %v897_v44 = vmax.f32 %v317_v26, %v318_v35  ;;  %v290_v45 = vrot.slane %v289_v36, 2  ;;  %v942_v25 = vld [vmem:[%s863_s5 + $0x78] sm:$0xff] }
  0x18   : > { %524 = vmatpush.msrb.mxu1 %v470_v7  ;;  %v249_v47 = vmax.f32 %v247_v29, %v248_v38  ;;  %v325_v48 = vrot.slane %v324_v39, 2  ;;  %v276_v49 = vrot.slane %v275_v40, 2  ;;  %v254_v50 = vmax.f32 %v252_v32, %v253_v41 }
  0x19   : > { %v243_v51 = vrot.slane %v242_v42, 1  ;;  %v285_v52 = vrot.slane %v284_v43, 1  ;;  %v905_v54 = vmax.f32 %v289_v36, %v290_v45  ;;  %v320_v61 = vrot.slane %v897_v44, 1 }
  0x1a   : > { %525 = vmatpush.msrb.mxu1 %v469_v28  ;;  %v250_v53 = vrot.slane %v249_v47, 1  ;;  %v907_v55 = vmax.f32 %v275_v40, %v276_v49  ;;  %v255_v56 = vrot.slane %v254_v50, 2  ;;  %v915_v62 = vmax.f32 %v324_v39, %v325_v48 }
  0x1b   : > { %v244_v60 = vmax.f32 %v242_v42, %v243_v51  ;;  %v920_v1 = vmax.f32 %v284_v43, %v285_v52  ;;  %v294_v2 = vsel %vm237_vm0, %v229_v57, -inf  ;;  %v329_v3 = vsel %vm237_vm0, %v234_v58, -inf }
  0x1c   : > { %720 = vmatmul.msk.f32.gmra.mxu0 %vm237_vm0, %v222_v11  ;;  %526 = vmatpush.msrb.mxu1 %v468_v37  ;;  %v256_v63 = vmax.f32 %v254_v50, %v255_v56  ;;  %v259_v4 = vsel %vm237_vm0, %v912_v59, -inf  ;;  %v251_v7 = vmax.f32 %v249_v47, %v250_v53  ;;  %v292_v8 = vrot.slane %v905_v54, 1 }
  0x1d   : > { %726 = vmatmul.msk.f32.gmra.mxu2 %vm237_vm0, %v228_v12  ;;  %731 = vmatmul.msk.f32.gmra.mxu3 %vm237_vm0, %v233_v13  ;;  %v278_v9 = vrot.slane %v907_v55, 1  ;;  %v295_v11 = vrot.slane %v294_v2, 4  ;;  %v330_v12 = vrot.slane %v329_v3, 4  ;;  %v260_v13 = vrot.slane %v259_v4, 4 }
  0x1e   : > { %527 = vmatpush.msrb.mxu1 %v467_v46  ;;  %v257_v10 = vrot.slane %v256_v63, 1  ;;  %v266_v14 = vsel %vm237_vm0, %v918_v0, -inf  ;;  %v301_v18 = vsel %vm237_vm0, %v230_v5, -inf  ;;  %v336_v20 = vsel %vm237_vm0, %v235_v6, -inf }
  0x1f   : > { %v267_v17 = vrot.slane %v266_v14, 4  ;;  %v296_v21 = vmax.f32 %v294_v2, %v295_v11  ;;  %v331_v22 = vmax.f32 %v329_v3, %v330_v12  ;;  %v261_v23 = vmax.f32 %v259_v4, %v260_v13 }
  0x20   : > { %v258_v16 = vmax.f32 %v256_v63, %v257_v10  ;;  %v302_v24 = vrot.slane %v301_v18, 4  ;;  %v488_v26 = vsel %vm487_vm1, %v251_v7, %v244_v60  ;;  %v337_v27 = vrot.slane %v336_v20, 4 }
  0x21   : > { %v308_v28 = vsel %vm237_vm0, %v933_v15, -inf  ;;  %v297_v29 = vrot.slane %v296_v21, 2  ;;  %v332_v30 = vrot.slane %v331_v22, 2  ;;  %v262_v31 = vrot.slane %v261_v23, 2 }
  0x22   : > { %v303_v32 = vmax.f32 %v301_v18, %v302_v24  ;;  %v338_v34 = vmax.f32 %v336_v20, %v337_v27  ;;  %v309_v35 = vrot.slane %v308_v28, 4  ;;  %v343_v36 = vsel %vm237_vm0, %v942_v25, -inf }
  0x23   : > { %v490_v37 = vsel %vm489_vm2, %v258_v16, %v488_v26  ;;  %v298_v38 = vmax.f32 %v296_v21, %v297_v29  ;;  %v263_v39 = vmax.f32 %v261_v23, %v262_v31  ;;  %v344_v45 = vrot.slane %v343_v36, 4 }
  0x24   : > { %721 = vmatmul.msk.f32.gmra.mxu0 %vm237_vm0, %v883_v19  ;;  %v268_v19 = vmax.f32 %v266_v14, %v267_v17  ;;  %v304_v40 = vrot.slane %v303_v32, 2  ;;  %v339_v42 = vrot.slane %v338_v34, 2  ;;  %v310_v43 = vmax.f32 %v308_v28, %v309_v35 }
  0x25   : > { %727 = vmatmul.msk.f32.gmra.mxu2 %vm237_vm0, %v229_v57  ;;  %732 = vmatmul.msk.f32.gmra.mxu3 %vm237_vm0, %v234_v58  ;;  %v299_v46 = vrot.slane %v298_v38, 1  ;;  %v333_v47 = vmax.f32 %v331_v22, %v332_v30  ;;  %v264_v48 = vrot.slane %v263_v39, 1  ;;  %v345_v53 = vmax.f32 %v343_v36, %v344_v45 }
  0x26   : > { %v269_v33 = vrot.slane %v268_v19, 2  ;;  %v305_v49 = vmax.f32 %v303_v32, %v304_v40  ;;  %v340_v51 = vmax.f32 %v338_v34, %v339_v42  ;;  %v311_v52 = vrot.slane %v310_v43, 2 }
  0x27   : > { %v279_v56 = vmax.f32 %v907_v55, %v278_v9  ;;  %v300_v57 = vmax.f32 %v298_v38, %v299_v46  ;;  %v265_v58 = vmax.f32 %v263_v39, %v264_v48  ;;  %v327_v63 = vrot.slane %v915_v62, 1 }
  0x28   : > { %v270_v41 = vmax.f32 %v268_v19, %v269_v33  ;;  %v306_v60 = vrot.slane %v305_v49, 1  ;;  %v312_v3 = vmax.f32 %v310_v43, %v311_v52  ;;  %v346_v4 = vrot.slane %v345_v53, 2  ;;  %v987_v33 = vld [vmem:[%s1056_s3] ss:$0 sm:$0xff] }
  0x29   : > { %v334_v7 = vrot.slane %v333_v47, 1  ;;  %v492_v10 = vsel %vm491_vm3, %v265_v58, %v490_v37  ;;  %v341_v11 = vrot.slane %v340_v51, 1  ;;  %v328_v16 = vmax.f32 %v915_v62, %v327_v63 }
  0x2a   : > { %v271_v50 = vrot.slane %v270_v41, 1  ;;  %v307_v55 = vmax.f32 %v305_v49, %v306_v60  ;;  %v313_v12 = vrot.slane %v312_v3, 1 }
  0x2b   : > { %v335_v18 = vmax.f32 %v333_v47, %v334_v7  ;;  %v342_v21 = vmax.f32 %v340_v51, %v341_v11 }
  0x2c   : > { %722 = vmatmul.msk.f32.gmra.mxu0 %vm237_vm0, %v912_v59  ;;  %v272_v2 = vmax.f32 %v270_v41, %v271_v50  ;;  %v293_v59 = vmax.f32 %v905_v54, %v292_v8  ;;  %v501_v14 = vsel %vm487_vm1, %v307_v55, %v300_v57  ;;  %v314_v8 = vmax.f32 %v312_v3, %v313_v12 }
  0x2d   : > { %728 = vmatmul.msk.f32.gmra.mxu2 %vm237_vm0, %v230_v5  ;;  %733 = vmatmul.msk.f32.gmra.mxu3 %vm237_vm0, %v235_v6  ;;  %v347_v5 = vmax.f32 %v345_v53, %v346_v4  ;;  %v321_v6 = vmax.f32 %v897_v44, %v320_v61 }
  0x2e   : > { %v494_v9 = vsel %vm493_vm4, %v272_v2, %v492_v10  ;;  %v502_v22 = vsel %vm489_vm2, %v314_v8, %v501_v14 }
  0x2f   : > { %v496_v13 = vsel %vm495_vm5, %v279_v56, %v494_v9  ;;  %v348_v17 = vrot.slane %v347_v5, 1  ;;  %v503_v61 = vsel %vm491_vm3, %v321_v6, %v502_v22 }
  0x30   : > { %v498_v54 = vsel %vm497_vm6, %v920_v1, %v496_v13  ;;  %v504_v62 = vsel %vm493_vm4, %v328_v16, %v503_v61 }
  0x31   : > { %v500_v20 = vsel %vm499_vm7, %v293_v59, %v498_v54  ;;  %v349_v44 = vmax.f32 %v347_v5, %v348_v17  ;;  %v505_v1 = vsel %vm495_vm5, %v335_v18, %v504_v62 }
  0x32   : > { %735 = vmatmul.msk.f32.vlgmr.msrb.gmra.mxu1 %vm237_vm0, %v500_v20  ;;  %v506_v23 = vsel %vm497_vm6, %v342_v21, %v505_v1 }
  0x33   : > { %v507_v24 = vsel %vm499_vm7, %v349_v44, %v506_v23 }
  0x34   : > { %723 = vmatmul.msk.f32.gmra.mxu0 %vm237_vm0, %v918_v0 }
  0x35   : > { %729 = vmatmul.msk.f32.gmra.mxu2 %vm237_vm0, %v933_v15  ;;  %734 = vmatmul.msk.f32.gmra.mxu3 %vm237_vm0, %v942_v25 }
  0x3a   : > { %736 = vmatmul.msk.f32.gmra.mxu1 %vm237_vm0, %v507_v24 }
  0x91   : > { %v419_v0 = vpop.f32.mrf.mxu0 }
  0x92   : > { %v539_v34 = vadd.f32 %v987_v33, %v419_v0 }
  0x94   : > { %v434_v30 = vpop.f32.mrf.mxu1 }
  0x95   : > { %v544_v35 = vadd.f32 %v987_v33, %v434_v30 }
  0x98   : > { %v437_v26 = vpop.f32.mrf.mxu2  ;;  %v452_v19 = vpop.f32.mrf.mxu3 }
  0x99   : > { %v422_v27 = vpop.f32.mrf.mxu0  ;;  %v545_v38 = vadd.f32 %v987_v33, %v437_v26  ;;  %v550_v55 = vadd.f32 %v987_v33, %v452_v19 }
  0x9a   : > { %v540_v39 = vadd.f32 %v987_v33, %v422_v27 }
  0xa0   : > { %v440_v28 = vpop.f32.mrf.mxu2  ;;  %v455_v29 = vpop.f32.mrf.mxu3 }
  0xa1   : > { %v425_v15 = vpop.f32.mrf.mxu0  ;;  %v546_v4 = vadd.f32 %v987_v33, %v440_v28  ;;  %v551_v9 = vadd.f32 %v987_v33, %v455_v29 }
  0xa2   : > { %v541_v40 = vadd.f32 %v987_v33, %v425_v15 }
  0xa8   : > { %v443_v31 = vpop.f32.mrf.mxu2  ;;  %v458_v25 = vpop.f32.mrf.mxu3 }
  0xa9   : > { %v428_v32 = vpop.f32.mrf.mxu0  ;;  %v547_v6 = vadd.f32 %v987_v33, %v443_v31  ;;  %v552_v13 = vadd.f32 %v987_v33, %v458_v25 }
  0xaa   : > { %v542_v42 = vadd.f32 %v987_v33, %v428_v32 }
  0xaf   : > { %v529_v41 = vpop.f32.mrf.mxu1 }
  0xb0   : > { %v446_v36 = vpop.f32.mrf.mxu2  ;;  %v461_v37 = vpop.f32.mrf.mxu3  ;;  %v557_v45 = vrot.slane %v529_v41, 1  ;;  %v558_v46 = vrot.slane %v529_v41, 2  ;;  %v561_v47 = vrot.slane %v529_v41, 5  ;;  %v562_v48 = vrot.slane %v529_v41, 6 }
  0xb1   : > { %v431_v43 = vpop.f32.mrf.mxu0  ;;  %v563_v49 = vrot.slane %v529_v41, 7  ;;  %v571_v50 = vperm.slane %v529_v41, 0  ;;  %v559_v51 = vrot.slane %v529_v41, 3  ;;  %v560_v3 = vrot.slane %v529_v41, 4 }
  0xb2   : > { %v543_v52 = vadd.f32 %v987_v33, %v431_v43  ;;  %v572_v53 = vperm.slane %v557_v45, 0  ;;  %v573_v56 = vperm.slane %v558_v46, 0  ;;  %v576_v57 = vperm.slane %v561_v47, 0 }
  0xb3   : > { %v577_v58 = vperm.slane %v562_v48, 0  ;;  %v578_v60 = vperm.slane %v563_v49, 0  ;;  %v603_v63 = vsub.f32 %v539_v34, %v571_v50  ;;  %v574_v2 = vperm.slane %v559_v51, 0 }
  0xb4   : > { %v604_v59 = vsub.f32 %v540_v39, %v572_v53  ;;  %v605_v7 = vsub.f32 %v541_v40, %v573_v56  ;;  %v608_v10 = vsub.f32 %v544_v35, %v576_v57  ;;  %v575_v12 = vperm.slane %v560_v3, 0 }
  0xb5   : > { %v609_v11 = vsub.f32 %v545_v38, %v577_v58  ;;  %619 = vst.msk [vmem:[%s1001_s21] sm:$0xff] %vm237_vm0, %v603_v63  ;;  %v610_v5 = vsub.f32 %v546_v4, %v578_v60  ;;  %v548_v14 = vadd.f32 %v987_v33, %v446_v36  ;;  %v606_v54 = vsub.f32 %v542_v42, %v574_v2 }
  0xb6   : > { %620 = vst.msk [vmem:[%s1001_s21 + $0x8] sm:$0xff] %vm237_vm0, %v604_v59  ;;  %v553_v17 = vadd.f32 %v987_v33, %v461_v37  ;;  %v607_v18 = vsub.f32 %v543_v52, %v575_v12 }
  0xb7   : > { %621 = vst.msk [vmem:[%s1001_s21 + $0x10] sm:$0xff] %vm237_vm0, %v605_v7  ;;  %v532_v8 = vpop.f32.mrf.mxu1 }
  0xb8   : > { %v449_v16 = vpop.f32.mrf.mxu2  ;;  %624 = vst.msk [vmem:[%s1001_s21 + $0x28] sm:$0xff] %vm237_vm0, %v608_v10  ;;  %v566_v21 = vrot.slane %v532_v8, 3  ;;  %v567_v22 = vrot.slane %v532_v8, 4  ;;  %v568_v44 = vrot.slane %v532_v8, 5  ;;  %v579_v61 = vperm.slane %v532_v8, 0  ;;  %v464_v62 = vpop.f32.mrf.mxu3 }
  0xb9   : > { %v549_v20 = vadd.f32 %v987_v33, %v449_v16  ;;  %625 = vst.msk [vmem:[%s1001_s21 + $0x30] sm:$0xff] %vm237_vm0, %v609_v11  ;;  %v564_v1 = vrot.slane %v532_v8, 1  ;;  %v569_v23 = vrot.slane %v532_v8, 6  ;;  %v565_v24 = vrot.slane %v532_v8, 2 }
  0xba   : > { %v570_v0 = vrot.slane %v532_v8, 7  ;;  %626 = vst.msk [vmem:[%s1001_s21 + $0x38] sm:$0xff] %vm237_vm0, %v610_v5  ;;  %v582_v26 = vperm.slane %v566_v21, 0  ;;  %v583_v19 = vperm.slane %v567_v22, 0  ;;  %v584_v27 = vperm.slane %v568_v44, 0 }
  0xbb   : > { %v611_v28 = vsub.f32 %v547_v6, %v579_v61  ;;  %622 = vst.msk [vmem:[%s1001_s21 + $0x18] sm:$0xff] %vm237_vm0, %v606_v54  ;;  %v580_v29 = vperm.slane %v564_v1, 0  ;;  %v585_v15 = vperm.slane %v569_v23, 0  ;;  %v581_v30 = vperm.slane %v565_v24, 0 }
  0xbc   : > { %v554_v31 = vadd.f32 %v987_v33, %v464_v62  ;;  %v614_v25 = vsub.f32 %v550_v55, %v582_v26  ;;  %v615_v32 = vsub.f32 %v551_v9, %v583_v19  ;;  %v616_v34 = vsub.f32 %v552_v13, %v584_v27  ;;  %623 = vst.msk [vmem:[%s1001_s21 + $0x20] sm:$0xff] %vm237_vm0, %v607_v18 }
  0xbd   : > { %627 = vst.msk [vmem:[%s1001_s21 + $0x40] sm:$0xff] %vm237_vm0, %v611_v28  ;;  %v586_v35 = vperm.slane %v570_v0, 0  ;;  %v612_v36 = vsub.f32 %v548_v14, %v580_v29  ;;  %v617_v37 = vsub.f32 %v553_v17, %v585_v15  ;;  %v613_v38 = vsub.f32 %v549_v20, %v581_v30 }
  0xbe   : > { %630 = vst.msk [vmem:[%s1001_s21 + $0x58] sm:$0xff] %vm237_vm0, %v614_v25 }
  0xbf   : > { %631 = vst.msk [vmem:[%s1001_s21 + $0x60] sm:$0xff] %vm237_vm0, %v615_v32  ;;  %v618_v33 = vsub.f32 %v554_v31, %v586_v35 }
  0xc0   : > { %632 = vst.msk [vmem:[%s1001_s21 + $0x68] sm:$0xff] %vm237_vm0, %v616_v34 }
  0xc1   : > { %628 = vst.msk [vmem:[%s1001_s21 + $0x48] sm:$0xff] %vm237_vm0, %v612_v36 }
  0xc2   : > { %633 = vst.msk [vmem:[%s1001_s21 + $0x70] sm:$0xff] %vm237_vm0, %v617_v37 }
  0xc3   : > { %629 = vst.msk [vmem:[%s1001_s21 + $0x50] sm:$0xff] %vm237_vm0, %v613_v38 }
  0xc4   : > { %634 = vst.msk [vmem:[%s1001_s21 + $0x78] sm:$0xff] %vm237_vm0, %v618_v33 }
  0xc5 PF: > { %s14_s17 = sadd.s32 1, %s798_s17   ;;  %s1058_s15 = smov %s794_s16 }
  0xc6   : > { %p11_p5 = scmp.ge.s32.totalorder %s14_s17, 6   ;;  %s1059_s16 = smov %s1061_s18 }
  0xc8   :  { %13 = sbr.rel (!%p11_p5) target bundleno = 2 (0x2), region = 66 }

</bundles_post_ra>
